<compile_context>
chip_gen: v7x
topology: tpu7x:2x2x1
jax: 0.10.0
libtpu: 0.0.40
codegen_flags: <defaults>
</compile_context>

<pallas_src>
import math

import jax
import jax.numpy as jnp
from jax import lax
from jax.experimental import pallas as pl
from jax.experimental.pallas import tpu as pltpu


def _conv_gemm_kernel(w_ref, b_ref, p_ref, o_ref):
    """One (Cout, KKC) @ (KKC, TM) GEMM tile + fused bias.

    w_ref: (Cout, KKC)    folded weight slab (KKC = Cin*K*K), resident across grid
    b_ref: (Cout, 1)      bias (f32)
    p_ref: (1, KKC, TM)   im2col patches: one batch element, one spatial tile
    o_ref: (1, Cout, TM)  output tile; lane dim = flattened spatial -> dense stores
    """
    acc = jnp.dot(w_ref[...], p_ref[0],
                  preferred_element_type=jnp.float32)       # (Cout, TM) f32 acc
    o_ref[0] = (acc + b_ref[...]).astype(o_ref.dtype)


def my_dilated_conv2d(x_nchw, weight, bias, *, dilation=1, compute_dtype=None):
    """x_nchw: (N, Cin, H, W); weight: (Cout, Cin, K, K); bias: (Cout,).

    compute_dtype: optional (e.g. jnp.bfloat16) dtype for the GEMM operands;
    accumulation and output stay float32 / input dtype.
    """
    N, Cin, H, W = x_nchw.shape
    Cout, Cin_w, K, K2 = weight.shape
    assert Cin_w == Cin and K2 == K
    pad = K // 2  # MyConv2d default padding (not dilation-adjusted), as in the module

    Ho = H + 2 * pad - dilation * (K - 1)
    Wo = W + 2 * pad - dilation * (K - 1)
    assert Ho > 0 and Wo > 0, "kernel/dilation too large for this input"

    out_dtype = x_nchw.dtype
    cdt = out_dtype if compute_dtype is None else compute_dtype

    KKC = Cin * K * K
    M = Ho * Wo

    # im2col (single XLA op): (N, Cin*K*K, Ho, Wo). Channel order is
    # (cin, kh, kw) row-major, which matches weight.reshape(Cout, Cin*K*K).
    # The zero halo from `padding` reproduces the module's F.conv2d padding exactly.
    # TODO(synk): for very large H*W*Cin, replace wrapper im2col (K*K HBM
    # amplification) with in-kernel tap gathering via halo DMA + a contraction
    # grid axis with an accumulator scratch.
    patches = lax.conv_general_dilated_patches(
        x_nchw.astype(cdt),
        filter_shape=(K, K),
        window_strides=(1, 1),
        padding=[(pad, pad), (pad, pad)],
        rhs_dilation=(dilation, dilation),
        dimension_numbers=("NCHW", "OIHW", "NCHW"),
    ).reshape(N, KKC, M)  # contiguous merge of (Ho, Wo) -> Ho*Wo (no relayout)

    w_mat = weight.reshape(Cout, KKC).astype(cdt)   # single weight slab, no per-tap tiles
    b_col = bias.reshape(Cout, 1).astype(jnp.float32)

    # Lane tile over the flattened spatial dim: keep >=2 tiles for small images so
    # the pipeline has steps to overlap; large images get 512-wide tiles.
    if M <= 128:
        TM = M
    elif M < 1024:
        TM = 128
    else:
        TM = 512
    m_tiles = pl.cdiv(M, TM)   # ragged last tile: OOB reads unused, OOB stores masked

    out_flat = pl.pallas_call(
        _conv_gemm_kernel,
        out_shape=jax.ShapeDtypeStruct((N, Cout, M), out_dtype),
        grid_spec=pltpu.PrefetchScalarGridSpec(
            num_scalar_prefetch=0,
            grid=(N, m_tiles),
            in_specs=[
                pl.BlockSpec((Cout, KKC), lambda n, m: (0, 0)),
                pl.BlockSpec((Cout, 1), lambda n, m: (0, 0)),
                pl.BlockSpec((1, KKC, TM), lambda n, m: (n, 0, m)),
            ],
            out_specs=pl.BlockSpec((1, Cout, TM), lambda n, m: (n, 0, m)),
        ),
        compiler_params=pltpu.CompilerParams(
            dimension_semantics=("parallel", "parallel"),
            vmem_limit_bytes=32 * 1024 * 1024,
        ),
    )(w_mat, b_col, patches)

    # (N, Cout, Ho*Wo) -> (N, Cout, Ho, Wo): contiguous split; NCHW directly,
    # no output transpose pass.
    return out_flat.reshape(N, Cout, Ho, Wo)


def init_params(key, in_channels, out_channels, kernel_size):
    n = in_channels * kernel_size * kernel_size
    stdv = 1.0 / math.sqrt(n)
    kw, kb = jax.random.split(key)
    weight = jax.random.uniform(
        kw, (out_channels, in_channels, kernel_size, kernel_size),
        minval=-stdv, maxval=stdv, dtype=jnp.float32)
    bias = jax.random.uniform(
        kb, (out_channels,), minval=-stdv, maxval=stdv, dtype=jnp.float32)
    return weight, bias


if __name__ == "__main__":
    key = jax.random.PRNGKey(0)
    k_x, k_p = jax.random.split(key)

    # Small shapes: N=2, Cin=4, Cout=8, H=W=16, K=3, dilation=2
    N, Cin, Cout, H, W, K, dilation = 2, 4, 8, 16, 16, 3, 2
    x = jax.random.normal(k_x, (N, Cin, H, W), dtype=jnp.float32)
    weight, bias = init_params(k_p, Cin, Cout, K)

    out = my_dilated_conv2d(x, weight, bias, dilation=dilation)
    jax.block_until_ready(out)

    # Reference: XLA conv with the same semantics as F.conv2d.
    ref = lax.conv_general_dilated(
        x, weight,
        window_strides=(1, 1),
        padding=[(K // 2, K // 2), (K // 2, K // 2)],
        rhs_dilation=(dilation, dilation),
        dimension_numbers=("NCHW", "OIHW", "NCHW"),
    ) + bias[None, :, None, None]
    assert out.shape == ref.shape
    assert jnp.allclose(out, ref, atol=1e-4, rtol=1e-4), \
        float(jnp.max(jnp.abs(out - ref)))

    # bf16-operand path (MXU-friendly on v5e/v6e/v7x), f32 accumulation.
    out_bf16 = my_dilated_conv2d(x, weight, bias, dilation=dilation,
                                 compute_dtype=jnp.bfloat16)
    jax.block_until_ready(out_bf16)
    assert out_bf16.shape == ref.shape
    assert jnp.allclose(out_bf16, ref, atol=5e-2, rtol=5e-2), \
        float(jnp.max(jnp.abs(out_bf16 - ref)))

    print("KERNEL_OK")
</pallas_src>

<mosaic_0001>
module attributes {stable_mosaic.version = 11 : i64} {
  func.func @_conv_gemm_kernel(%arg0: i32, %arg1: i32, %arg2: memref<8x36xf32, #tpu.memory_space<vmem>>, %arg3: memref<8x1xf32, #tpu.memory_space<vmem>>, %arg4: memref<1x36x128xf32, #tpu.memory_space<vmem>>, %arg5: memref<1x8x128xf32, #tpu.memory_space<vmem>>) attributes {dimension_semantics = [#tpu.dimension_semantics<parallel>, #tpu.dimension_semantics<parallel>], iteration_bounds = array<i64: 2, 2>, scalar_prefetch = 0 : i64, scratch_operands = 0 : i64, tpu.core_type = #tpu.core_type<tc>, window_params = [{pipeline_mode = #tpu.pipeline_mode<synchronous>, transform_indices = @transform_0, window_bounds = array<i64: 8, 36>}, {pipeline_mode = #tpu.pipeline_mode<synchronous>, transform_indices = @transform_1, window_bounds = array<i64: 8, 1>}, {transform_indices = @transform_2, window_bounds = array<i64: 1, 36, 128>}, {transform_indices = @transform_3, window_bounds = array<i64: 1, 8, 128>}]} {
    %c0 = arith.constant 0 : index
    %c0_0 = arith.constant 0 : index
    %0 = vector.load %arg2[%c0, %c0_0] : memref<8x36xf32, #tpu.memory_space<vmem>>, vector<8x36xf32>
    %c0_1 = arith.constant 0 : index
    %c0_2 = arith.constant 0 : index
    %c0_3 = arith.constant 0 : index
    %1 = vector.load %arg4[%c0_1, %c0_2, %c0_3] : memref<1x36x128xf32, #tpu.memory_space<vmem>>, vector<1x36x128xf32>
    %2 = vector.shape_cast %1 : vector<1x36x128xf32> to vector<36x128xf32>
    %cst = arith.constant dense<0.000000e+00> : vector<8x128xf32>
    %3 = tpu.matmul %0, %2, %cst {dimension_numbers = #tpu.dot_dimension_numbers<[1], [0], [0], [1], [0, 0, 1, 1], [], []>} : vector<8x36xf32>, vector<36x128xf32>, vector<8x128xf32> -> vector<8x128xf32>
    %c0_4 = arith.constant 0 : index
    %c0_5 = arith.constant 0 : index
    %4 = vector.load %arg3[%c0_4, %c0_5] : memref<8x1xf32, #tpu.memory_space<vmem>>, vector<8x1xf32>
    %5 = vector.broadcast %4 : vector<8x1xf32> to vector<8x128xf32>
    %6 = arith.addf %3, %5 : vector<8x128xf32>
    %c0_6 = arith.constant 0 : index
    %c0_7 = arith.constant 0 : index
    %c0_8 = arith.constant 0 : index
    %7 = vector.load %arg5[%c0_6, %c0_7, %c0_8] : memref<1x8x128xf32, #tpu.memory_space<vmem>>, vector<1x8x128xf32>
    %8 = vector.shape_cast %7 : vector<1x8x128xf32> to vector<8x128xf32>
    %9 = vector.shape_cast %6 : vector<8x128xf32> to vector<1x8x128xf32>
    tpu.vector_store %arg5[%c0_6, %c0_7, %c0_8], %9 {strides = array<i32>} : memref<1x8x128xf32, #tpu.memory_space<vmem>>, vector<1x8x128xf32>,
    return
  }
  func.func @transform_0(%arg0: i32, %arg1: i32) -> (i32, i32) {
    %c0_i32 = arith.constant 0 : i32
    %c0_i32_0 = arith.constant 0 : i32
    %c0_i32_1 = arith.constant 0 : i32
    return %c0_i32, %c0_i32_0 : i32, i32
  }
  func.func @transform_1(%arg0: i32, %arg1: i32) -> (i32, i32) {
    %c0_i32 = arith.constant 0 : i32
    %c0_i32_0 = arith.constant 0 : i32
    %c0_i32_1 = arith.constant 0 : i32
    return %c0_i32, %c0_i32_0 : i32, i32
  }
  func.func @transform_2(%arg0: i32, %arg1: i32) -> (i32, i32, i32) {
    %c0_i32 = arith.constant 0 : i32
    %c0_i32_0 = arith.constant 0 : i32
    return %arg0, %c0_i32, %arg1 : i32, i32, i32
  }
  func.func @transform_3(%arg0: i32, %arg1: i32) -> (i32, i32, i32) {
    %c0_i32 = arith.constant 0 : i32
    %c0_i32_0 = arith.constant 0 : i32
    return %arg0, %c0_i32, %arg1 : i32, i32, i32
  }
}

</mosaic_0001>

<bundles_post_ra>
// kernel: tpu_custom_call.1
= control target key start
LH: loop header
LB: loop body
LE: loop exit
PB: predicated region body
PF: predicated region fallthrough
CT: control target
= control target key end

     0   :  { %8 = vsyncpa [#allocation4], 0  ;;  %s818_s0 = inlined_call_operand.vmem [shape: f32[8,36], index: 0, kind: input, shape index: {}]   ;;  %s819_s1 = inlined_call_operand.vmem [shape: f32[8,1], index: 1, kind: input, shape index: {}]   ;;  %s820_s2 = inlined_call_operand.vmem [shape: f32[2,36,196], index: 2, kind: input, shape index: {}]   ;;  %s821_s3 = inlined_call_operand.hbm [shape: f32[2,8,196], index: 3, kind: output, shape index: {}]  }
   0x1   :  { %10 = vsyncpa [#allocation4 + $0x1], 0  ;;  %s663_s12 = smov 0   ;;  %s665_s13 = smov 0  }
   0x2   :  { %s667_s14 = smov 0   ;;  %s669_s15 = smov 0  }
   0x3   :  { %s671_s16 = smov 0   ;;  %s673_s17 = smov 0  }
   0x4   :  { %s675_s18 = smov 0   ;;  %s677_s19 = smov 0  }
   0x5 LB: > { %s424_s20 = sadd.s32 4294967295, %s636_s19   ;;  %s425_s21 = sadd.s32 4294967294, %s636_s19   ;;  %s636_s19 = sphi %s677_s19, %s16_s19   ;;  %s632_s18 = sphi %s675_s18, %s831_s18   ;;  %s628_s17 = sphi %s673_s17, %s830_s17   ;;  %s624_s16 = sphi %s671_s16, %s829_s16   ;;  %s620_s15 = sphi %s669_s15, %s828_s15   ;;  %s616_s14 = sphi %s667_s14, %s827_s14   ;;  %s612_s13 = sphi %s665_s13, %s826_s13   ;;  %s608_s12 = sphi %s663_s12, %s825_s12  }
   0x6   : > { %s25_s22 = sadd.s32 1, %s628_s17  ;;  %s28_s23 = sadd.s32 1, %s632_s18 }
   0x7   : > { %p26_p0 = scmp.ge.s32.totalorder %s25_s22, 2  ;;  %p86_p1 = scmp.ne.s32.totalorder %s616_s14, %s612_s13 }
   0x8   : > { %p87_p2 = scmp.eq.s32.totalorder %s636_s19, 0  ;;  %p118_p5 = scmp.eq.s32.totalorder %s424_s20, 3 }
   0x9   : > { %s833_s22 = smov (%p26_p0, %s25_s22), 0  ;;  %s835_s23 = smov (!%p26_p0, %s28_s23), %s632_s18 }
   0xa   : > { %s75_s24 = ssub.s32 %s628_s17, %s833_s22  ;;  %p715_p3 = por %p87_p2, %p86_p1 }
   0xb   : > { %p30_p4 = scmp.ge.s32.totalorder %s835_s23, 2  ;;  %p123_p6 = scmp.ne.s32.totalorder %s612_s13, %s608_s12 }
   0xc   : > { %p124_p7 = scmp.eq.s32.totalorder %s425_s21, 3  ;;  %p723_p8 = por %p118_p5, %p86_p1 }
   0xd   : > { %s837_s23 = smov (%p30_p4, %s835_s23), 0  ;;  %s79_s30 = sadd.s32 1, %s616_s14 }
   0xe   : > { %p727_p9 = por %p124_p7, %p123_p6  ;;  %s74_s28 = ssub.s32 %s632_s18, %s837_s23 }
   0xf   : > { %s76_s29 = sor.u32 %s75_s24, %s74_s28  ;;  %p427_p11 = scmp.ge.s32.totalorder %s636_s19, 4 }
  0x10   : > { %p77_p10 = scmp.eq.s32.totalorder %s76_s29, 0 }
  0x11   : > { %146 = sbr.rel (%p427_p11) target bundleno = 34 (0x22), region = 24 }
  0x12   : > { %s735_s4 = scalar_select %p77_p10, %s616_s14, %s79_s30  }
  0x18   : > { %149 = sbr.rel (!%p715_p3) target bundleno = 34 (0x22), region = 28  ;;  %s151_s5 = sand.u32 (%p715_p3), 1, %s616_s14  }
  0x19   : > { %s464_s6 = smul.u32 (%p715_p3), 10, %s632_s18 }
  0x1a   : > { %s463_s7 = smul.u32 (%p715_p3), 40, %s151_s5 }
  0x1b   : > { %s155_s8 = sadd.s32 (%p715_p3), %s628_s17, %s464_s6 }
  0x1c   : > { %s428_s9 = sshll.u32 (%p715_p3), %s155_s8, 3  ;;  %s153_s21 = scalar_lea.vmem (%p715_p3), [#allocation2], %s463_s7 }
  0x1d   : > { %s157_s20 = scalar_lea.vmem (%p715_p3), %s820_s2, %s428_s9 }
  0x1e   : > { %v193_v0 = vld [vmem:[%s157_s20] sm:$0xff] (%p715_p3)  ;;  %v195_v1 = vld [vmem:[%s157_s20 + $0x10] sm:$0xff] (%p715_p3) }
  0x1f   : > { %v197_v2 = vld [vmem:[%s157_s20 + $0x20] sm:$0xff]  ;;  %194 = vst [vmem:[%s153_s21] sm:$0xff] %v193_v0  ;;  %196 = vst [vmem:[%s153_s21 + $0x8] sm:$0xff] %v195_v1  ;;  %v199_v3 = vld [vmem:[%s157_s20 + $0x30] sm:$0xff] }
  0x20   : > { %198 = vst [vmem:[%s153_s21 + $0x10] sm:$0xff] %v197_v2  ;;  %v201_v4 = vld [vmem:[%s157_s20 + $0x40] sm:$0xff]  ;;  %200 = vst [vmem:[%s153_s21 + $0x18] sm:$0xff] %v199_v3 }
  0x21   : > { %202 = vst [vmem:[%s153_s21 + $0x20] sm:$0xff] %v201_v4 }
  0x22 PF: > { %p429_p12 = scmp.ge.s32.totalorder %s636_s19, 1  ;;  %p207_p13 = scmp.lt.s32.totalorder %s636_s19, 5 }
  0x24   : > { %p208_p0 = pnand %p429_p12, %p207_p13 }
  0x25   : > { %s749_s24 = sand.u32 (!%p208_p0), 1, %s612_s13   ;;  %v638_v5 = vmov (!%p208_p0), 0.0|0.0   ;;  %vm639_vm0 = vmmov (!%p208_p0), 0   ;;  %v640_v6 = vmov (!%p208_p0), 0.0   ;;  %v243_v7 = vld [vmem:[%s819_s1] sm:$0xff] (!%p208_p0)  ;;  %v641_v8 = vmov (!%p208_p0), 0  }
  0x26   : > { %211 = sbr.rel (%p208_p0) target bundleno = 282 (0x11a), region = 66  ;;  %457 = vmatprep.subr.bf16.mxu0 (!%p208_p0), %v638_v5  ;;  %454 = vmatprep.mubr.msk.f32.mxu0 (!%p208_p0), %vm639_vm0, %v640_v6  ;;  %vm253_vm1 = vcmask (!%p208_p0), 1043456   ;;  %v237_v16 = vld [vmem:[%s818_s0] sm:$0xff] (!%p208_p0)  ;;  %vm249_vm2 = vcmask (!%p208_p0), 293888   ;;  %s430_s7 = sshll.u32 (!%p208_p0), %s749_s24, 3 }
  0x27   : > { %s465_s25 = smul.u32 (!%p208_p0), 40, %s749_s24  ;;  %541 = vset.pattern.permute.xlu0 (!%p208_p0), %v641_v8  ;;  %s434_s8 = sshll.u32 (!%p208_p0), %s624_s16, 1 }
  0x28   : > { %246 = vperm.xlu0 (!%p208_p0), %541, %v243_v7   ;;  %s340_s9 = sadd.s32 (!%p208_p0), %s620_s15, %s434_s8  ;;  %s236_s11 = scalar_lea.vmem (!%p208_p0), [#allocation3], %s430_s7 }
  0x29   : > { %s216_s30 = scalar_lea.vmem (!%p208_p0), [#allocation2], %s465_s25  ;;  %s435_s10 = sshll.u32 (!%p208_p0), %s340_s9, 7 }
  0x2a   : > { %v238_v9 = vld [vmem:[%s216_s30] sm:$0xff] (!%p208_p0)  ;;  %v239_v10 = vld [vmem:[%s216_s30 + $0x8] sm:$0xff] (!%p208_p0)  ;;  %v240_v11 = vld [vmem:[%s216_s30 + $0x10] sm:$0xff] (!%p208_p0)  ;;  %s344_s20 = sshll.u32 (!%p208_p0), %s236_s11, 4  ;;  %s764_s28 = scalar_lea.hbm (!%p208_p0), %s821_s3, %s435_s10  ;;  %s766_s20 = int_to_ptr.vmem [resolvable:$true] %s344_s20 }
  0x2b   : > { %v458_v12 = vpack.c.bf16 (!%p208_p0), %v239_v10, %v238_v9  ;;  %v241_v13 = vld [vmem:[%s216_s30 + $0x18] sm:$0xff] (!%p208_p0)  ;;  %v242_v15 = vld [vmem:[%s216_s30 + $0x20] sm:$0xf] (!%p208_p0)  ;;  %s329_s16 = scalar_lea.sflag (!%p208_p0), [#allocation4], %s749_s24  ;;  %s542_s15 = scalar_lea.vmem (!%p208_p0), %s766_s20, 128 }
  0x2c   : > { %v461_v14 = vpack.c.bf16 (!%p208_p0), %v241_v13, %v240_v11  ;;  %p543_p1 = scmp.ne.s32.totalorder (!%p208_p0), %s766_s20, %s542_s15  ;;  %s642_s29 = smov (!%p208_p0), [#allocation3]  }
  0x2d   : > { %459 = vmatpush3.bf16.msra.mxu0 %v458_v12  ;;  %s546_s30 = sshll.u32 %s642_s29, 4  ;;  %s547_s30 = int_to_ptr.vmem [resolvable:$false] %s546_s30 }
  0x2e   : > { %460 = vmatprep.subr.bf16.mxu0 %v638_v5  ;;  %p544_p2 = pnand %p543_p1, %p723_p8  ;;  %s548_s5 = scalar_lea.vmem %s547_s30, 256 }
  0x2f   : > { %p549_p4 = scmp.lt.s32.totalorder %s766_s20, %s547_s30  ;;  %p550_p5 = scmp.lt.s32.totalorder %s548_s5, %s542_s15 }
  0x30   : > { %p545_p3 = pneg %p544_p2 }
  0x31   : > { %462 = vmatpush3.bf16.msra.mxu0 %v461_v14  ;;  %p551_p6 = por %p550_p5, %p549_p4 }
  0x32   : > { %452 = vmatprep.subr.mxu0 %v640_v6 }
  0x33   : > { %p552_p7 = pnand %p551_p6, %p545_p3 }
  0x35   : > { %453 = vmatpush3.msk.msra.mxu0 %vm253_vm1, %v242_v15 }
  0x36   : > { %455 = vmatmul.mubr.msk.f32.vlgmr.msra.gmra.mrb[0].mxu0 %vm249_vm2, %v237_v16 }
  0xa7   : > { %v247_v17 = vpop.permute.xlu0 %246 }
 0x109   : > { %v323_v18 = vpop.f32.mrb[0].mxu0 }
 0x10a   : > { %v324_v19 = vadd.f32 %v323_v18, %v247_v17  ;;  %v456_v20 = vpop.f32.mrb[1].mxu0 }
 0x10c   : > { %327 = vst [vmem:[%s236_s11] sm:$0xff] %v324_v19 }
 0x10d   : > { %555 = shalt.err (!%p552_p7)
}
 0x10e   : > { %s556_s24 = scalar_lea.hbm %s764_s28, 128  ;;  %s560_s8 = scalar_lea.hbm %s821_s3, 512 }
 0x10f   : > { %p557_p10 = scmp.ne.s32.totalorder %s764_s28, %s556_s24  ;;  %p561_p13 = scmp.lt.u32.totalorder %s764_s28, %s821_s3 }
 0x110   : > { %p562_p0 = scmp.lt.u32.totalorder %s560_s8, %s556_s24  ;;  %p564_p2 = scmp.lt.u32.totalorder %s556_s24, %s764_s28 }
 0x111   : > { %p558_p11 = pnand %p557_p10, %p723_p8 }
 0x112   : > { %p563_p1 = por %p562_p0, %p561_p13 }
 0x113   : > { %p559_p12 = pneg %p558_p11 }
 0x114   : > { %p565_p3 = por %p564_p2, %p563_p1 }
 0x116   : > { %p566_p4 = pnand %p565_p3, %p559_p12 }
 0x118   : > { %569 = shalt.err (!%p566_p4)
}
 0x119   : > { %466 = dma.vmem_to_hbm [thread:$0]  (%p723_p8), %s766_s20, 128, %s764_s28, %s329_s16  }
 0x11a PF: > { %p472_p5 = scmp.ge.s32.totalorder %s636_s19, 2  ;;  %s356_s11 = sand.u32 1, %s608_s12  }
 0x11b   : > { %s357_s21 = scalar_lea.sflag [#allocation4], %s356_s11 }
 0x11c   : > { %p469_p6 = pnand %p472_p5, %p727_p9 }
 0x11e   : > { %603 = dma.done.wait (!%p469_p6), %s357_s21, 128  }
 0x11f   : > { %605 = vsyncadd (!%p469_p6), %s357_s21, 4294967168  ;;  %s16_s19 = sadd.s32 1, %s636_s19   ;;  %s825_s12 = smov %s612_s13 }
 0x120   : > { %p13_p7 = scmp.ge.s32.totalorder %s16_s19, 6   ;;  %s826_s13 = smov %s616_s14 }
 0x121   : > { %s827_s14 = smov %s735_s4  ;;  %s828_s15 = smov %s628_s17 }
 0x122   : > { %s829_s16 = smov %s632_s18  ;;  %s830_s17 = smov %s833_s22 }
 0x123   : > { %s831_s18 = smov %s837_s23  ;;  %15 = sbr.rel (!%p13_p7) target bundleno = 5 (0x5), region = 110 }
 0x12a   :  { %362 = vsyncpa [#allocation4], 1 }
 0x12b   :  { %364 = vsyncpa [#allocation4 + $0x1], 1 }

</bundles_post_ra>
